<compile_context>
chip_gen: v5e
topology: v5e:2x2
jax: 0.10.0
libtpu: 0.0.40
codegen_flags: <defaults>
</compile_context>

<pallas_src>
import functools

import jax
import jax.numpy as jnp
from jax.experimental import pallas as pl
from jax.experimental.pallas import tpu as pltpu


def _xe_loss_kernel(preds_ref, tgt_ref, out_ref, acc_ref, *, batch_total, tile_b):
    """One batch tile per grid step; per-row partial sums accumulated in VMEM."""
    i = pl.program_id(0)

    @pl.when(i == 0)
    def _():
        acc_ref[...] = jnp.zeros_like(acc_ref)

    x = preds_ref[...].astype(jnp.float32)                       # (TB, N)
    tgt = tgt_ref[...]                                           # (TB, 1) int32

    # Numerically stable log-sum-exp along the class axis.
    m = jnp.max(x, axis=-1, keepdims=True)                       # (TB, 1)
    lse = m + jnp.log(jnp.sum(jnp.exp(x - m), axis=-1, keepdims=True))

    # Target logit via masked select (no (TB, N) one-hot / logp materialization).
    col = jax.lax.broadcasted_iota(jnp.int32, x.shape, 1)        # (TB, N)
    tgt_logit = jnp.sum(jnp.where(col == tgt, x, 0.0), axis=-1, keepdims=True)

    # Mask tail rows when batch_total % tile_b != 0 (padded block rows are garbage).
    row = i * tile_b + jax.lax.broadcasted_iota(jnp.int32, (tile_b, 1), 0)
    valid = row < batch_total

    acc_ref[...] += jnp.where(valid, tgt_logit - lse, 0.0)       # (TB, 1)

    @pl.when(i == pl.num_programs(0) - 1)
    def _():
        out_ref[0] = -(jnp.sum(acc_ref[...]) / jnp.float32(batch_total))


def _pick_tile_b(B, N, dtype_bytes, tile_bytes_target=2 << 20, max_tile_b=2048):
    """Largest multiple-of-8 row tile that keeps a preds tile near ~2 MiB."""
    rows = tile_bytes_target // max(1, N * dtype_bytes)
    tile_b = max(8, min(max_tile_b, (rows // 8) * 8))
    b_padded = ((B + 7) // 8) * 8
    return min(tile_b, max(8, b_padded))


def xe_loss(preds, targets, *, tile_b=None):
    """preds: (B, item_num) float (f32 or bf16); targets: (B,) int -> scalar f32 loss."""
    B, N = preds.shape
    dtype_bytes = jnp.dtype(preds.dtype).itemsize
    if tile_b is None:
        tile_b = _pick_tile_b(B, N, dtype_bytes)
    assert tile_b % 8 == 0

    tgt = targets.astype(jnp.int32).reshape(B, 1)
    n_steps = pl.cdiv(B, tile_b)

    kernel = functools.partial(_xe_loss_kernel, batch_total=B, tile_b=tile_b)
    out = pl.pallas_call(
        kernel,
        out_shape=jax.ShapeDtypeStruct((1,), jnp.float32),
        grid_spec=pltpu.PrefetchScalarGridSpec(
            num_scalar_prefetch=0,
            grid=(n_steps,),
            in_specs=[
                pl.BlockSpec((tile_b, N), lambda i: (i, 0)),     # preds tile (native dtype)
                pl.BlockSpec((tile_b, 1), lambda i: (i, 0)),     # target indices
            ],
            out_specs=pl.BlockSpec((1,), lambda i: (0,), memory_space=pltpu.SMEM),
            scratch_shapes=[pltpu.VMEM((tile_b, 1), jnp.float32)],  # per-row running sum
        ),
        compiler_params=pltpu.CompilerParams(
            dimension_semantics=("arbitrary",),                  # accumulation axis
            vmem_limit_bytes=32 * 1024 * 1024,
        ),
        cost_estimate=pl.CostEstimate(
            flops=5 * B * N,
            transcendentals=B * N,
            bytes_accessed=B * N * dtype_bytes + B * 4 + 4,
        ),
    )(preds, tgt)
    return out[0]


def xe_loss_ref(preds, targets, item_num):
    """Pure-JAX reference matching the PyTorch forward exactly."""
    onehot = jax.nn.one_hot(targets, item_num, dtype=preds.dtype)
    logp = jax.nn.log_softmax(preds, axis=1)
    return -jnp.mean(jnp.sum(logp * onehot, axis=-1))


if __name__ == "__main__":
    # Small, deterministic example: batch=16, item_num=128
    B, ITEM_NUM = 16, 128
    key = jax.random.PRNGKey(0)
    kp, kt = jax.random.split(key)
    preds = jax.random.normal(kp, (B, ITEM_NUM), dtype=jnp.float32)
    targets = jax.random.randint(kt, (B,), 0, ITEM_NUM, dtype=jnp.int32)

    loss = jax.block_until_ready(xe_loss(preds, targets))
    ref = jax.block_until_ready(xe_loss_ref(preds, targets, ITEM_NUM))
    assert jnp.allclose(loss, ref, rtol=1e-5, atol=1e-5), (loss, ref)

    # Ragged-batch path: B not a multiple of the tile (tail rows masked in-kernel).
    B2 = 20
    kp2, kt2 = jax.random.split(jax.random.PRNGKey(0), 2)
    preds2 = jax.random.normal(kp2, (B2, ITEM_NUM), dtype=jnp.float32)
    targets2 = jax.random.randint(kt2, (B2,), 0, ITEM_NUM, dtype=jnp.int32)
    loss2 = jax.block_until_ready(xe_loss(preds2, targets2, tile_b=16))
    ref2 = jax.block_until_ready(xe_loss_ref(preds2, targets2, ITEM_NUM))
    assert jnp.allclose(loss2, ref2, rtol=1e-5, atol=1e-5), (loss2, ref2)

    print("KERNEL_OK")
</pallas_src>

<mosaic_0001>
module attributes {stable_mosaic.version = 11 : i64} {
  func.func @_xe_loss_kernel(%arg0: i32, %arg1: memref<16x128xf32, #tpu.memory_space<vmem>>, %arg2: memref<16x1xi32, #tpu.memory_space<vmem>>, %arg3: memref<1xf32, #tpu.memory_space<smem>>, %arg4: memref<16x1xf32, #tpu.memory_space<vmem>>) attributes {dimension_semantics = [#tpu.dimension_semantics<arbitrary>], iteration_bounds = array<i64: 1>, scalar_prefetch = 0 : i64, scratch_operands = 1 : i64, tpu.core_type = #tpu.core_type<tc>, window_params = [{transform_indices = @transform_0, window_bounds = array<i64: 16, 128>}, {transform_indices = @transform_1, window_bounds = array<i64: 16, 1>}, {transform_indices = @transform_2, window_bounds = array<i64: 1>}]} {
    %c0_i32 = arith.constant 0 : i32
    %0 = arith.cmpi eq, %arg0, %c0_i32 : i32
    %1 = arith.extui %0 : i1 to i32
    %c0_i32_0 = arith.constant 0 : i32
    %2 = arith.cmpi ne, %1, %c0_i32_0 : i32
    scf.if %2 {
      %cst_15 = arith.constant 0.000000e+00 : f32
      %36 = vector.broadcast %cst_15 : f32 to vector<16x1xf32>
      %c0_16 = arith.constant 0 : index
      %c0_17 = arith.constant 0 : index
      %37 = vector.load %arg4[%c0_16, %c0_17] : memref<16x1xf32, #tpu.memory_space<vmem>>, vector<16x1xf32>
      tpu.vector_store %arg4[%c0_16, %c0_17], %36 {strides = array<i32>} : memref<16x1xf32, #tpu.memory_space<vmem>>, vector<16x1xf32>,
    } else {
    }
    %c0 = arith.constant 0 : index
    %c0_1 = arith.constant 0 : index
    %3 = vector.load %arg1[%c0, %c0_1] : memref<16x128xf32, #tpu.memory_space<vmem>>, vector<16x128xf32>
    %c0_2 = arith.constant 0 : index
    %c0_3 = arith.constant 0 : index
    %4 = vector.load %arg2[%c0_2, %c0_3] : memref<16x1xi32, #tpu.memory_space<vmem>>, vector<16x1xi32>
    %cst = arith.constant dense<0xFF800000> : vector<16xf32>
    %5 = vector.multi_reduction <maximumf>, %3, %cst [1] : vector<16x128xf32> to vector<16xf32>
    %6 = vector.shape_cast %5 : vector<16xf32> to vector<16x1xf32>
    %7 = vector.broadcast %6 : vector<16x1xf32> to vector<16x128xf32>
    %8 = arith.subf %3, %7 : vector<16x128xf32>
    %9 = math.exp %8 : vector<16x128xf32>
    %cst_4 = arith.constant dense<0.000000e+00> : vector<16xf32>
    %10 = vector.multi_reduction <add>, %9, %cst_4 [1] : vector<16x128xf32> to vector<16xf32>
    %11 = vector.shape_cast %10 : vector<16xf32> to vector<16x1xf32>
    %12 = math.log %11 : vector<16x1xf32>
    %13 = arith.addf %6, %12 : vector<16x1xf32>
    %14 = tpu.iota {dimensions = array<i32: 1>} : vector<16x128xi32>
    %15 = vector.broadcast %4 : vector<16x1xi32> to vector<16x128xi32>
    %16 = arith.cmpi eq, %14, %15 : vector<16x128xi32>
    %cst_5 = arith.constant 0.000000e+00 : f32
    %17 = vector.broadcast %cst_5 : f32 to vector<16x128xf32>
    %18 = arith.select %16, %3, %17 : vector<16x128xi1>, vector<16x128xf32>
    %cst_6 = arith.constant dense<0.000000e+00> : vector<16xf32>
    %19 = vector.multi_reduction <add>, %18, %cst_6 [1] : vector<16x128xf32> to vector<16xf32>
    %20 = vector.shape_cast %19 : vector<16xf32> to vector<16x1xf32>
    %c16_i32 = arith.constant 16 : i32
    %21 = arith.muli %arg0, %c16_i32 : i32
    %22 = tpu.iota {dimensions = array<i32: 0>} : vector<16x1xi32>
    %23 = vector.broadcast %21 : i32 to vector<16x1xi32>
    %24 = arith.addi %23, %22 : vector<16x1xi32>
    %c16_i32_7 = arith.constant 16 : i32
    %25 = vector.broadcast %c16_i32_7 : i32 to vector<16x1xi32>
    %26 = arith.cmpi slt, %24, %25 : vector<16x1xi32>
    %c0_8 = arith.constant 0 : index
    %c0_9 = arith.constant 0 : index
    %27 = vector.load %arg4[%c0_8, %c0_9] : memref<16x1xf32, #tpu.memory_space<vmem>>, vector<16x1xf32>
    %28 = arith.subf %20, %13 : vector<16x1xf32>
    %cst_10 = arith.constant 0.000000e+00 : f32
    %29 = vector.broadcast %cst_10 : f32 to vector<16x1xf32>
    %30 = arith.select %26, %28, %29 : vector<16x1xi1>, vector<16x1xf32>
    %31 = arith.addf %27, %30 : vector<16x1xf32>
    %c0_11 = arith.constant 0 : index
    %c0_12 = arith.constant 0 : index
    %32 = vector.load %arg4[%c0_11, %c0_12] : memref<16x1xf32, #tpu.memory_space<vmem>>, vector<16x1xf32>
    tpu.vector_store %arg4[%c0_11, %c0_12], %31 {strides = array<i32>} : memref<16x1xf32, #tpu.memory_space<vmem>>, vector<16x1xf32>,
    %c0_i32_13 = arith.constant 0 : i32
    %33 = arith.cmpi eq, %arg0, %c0_i32_13 : i32
    %34 = arith.extui %33 : i1 to i32
    %c0_i32_14 = arith.constant 0 : i32
    %35 = arith.cmpi ne, %34, %c0_i32_14 : i32
    scf.if %35 {
      %c0_15 = arith.constant 0 : index
      %c0_16 = arith.constant 0 : index
      %36 = vector.load %arg4[%c0_15, %c0_16] : memref<16x1xf32, #tpu.memory_space<vmem>>, vector<16x1xf32>
      %37 = vector.shape_cast %36 : vector<16x1xf32> to vector<1x16x1xf32>
      %cst_17 = arith.constant dense<0.000000e+00> : vector<1xf32>
      %38 = vector.multi_reduction <add>, %37, %cst_17 [1, 2] : vector<1x16x1xf32> to vector<1xf32>
      %39 = vector.shape_cast %38 : vector<1xf32> to vector<1x1x1xf32>
      %40 = vector.extract %39[0, 0, 0] : f32 from vector<1x1x1xf32>
      %cst_18 = arith.constant 1.600000e+01 : f32
      %41 = arith.divf %40, %cst_18 : f32
      %cst_19 = arith.constant 0.000000e+00 : f32
      %42 = arith.subf %cst_19, %41 : f32
      %c0_20 = arith.constant 0 : index
      %43 = memref.load %arg3[%c0_20] : memref<1xf32, #tpu.memory_space<smem>>
      memref.store %42, %arg3[%c0_20] : memref<1xf32, #tpu.memory_space<smem>>
    } else {
    }
    return
  }
  func.func @transform_0(%arg0: i32) -> (i32, i32) {
    %c0_i32 = arith.constant 0 : i32
    %c0_i32_0 = arith.constant 0 : i32
    return %arg0, %c0_i32 : i32, i32
  }
  func.func @transform_1(%arg0: i32) -> (i32, i32) {
    %c0_i32 = arith.constant 0 : i32
    %c0_i32_0 = arith.constant 0 : i32
    return %arg0, %c0_i32 : i32, i32
  }
  func.func @transform_2(%arg0: i32) -> i32 {
    %c0_i32 = arith.constant 0 : i32
    %c0_i32_0 = arith.constant 0 : i32
    return %c0_i32 : i32
  }
}

</mosaic_0001>

<bundles_post_ra>
// kernel: tpu_custom_call.1
= control target key start
LH: loop header
LB: loop body
LE: loop exit
PB: predicated region body
PF: predicated region fallthrough
CT: control target
= control target key end

     0   :  { %v157_v2 = vmov 0   ;;  %s197_s0 = inlined_call_operand.vmem [shape: f32[16,128], index: 0, kind: input, shape index: {}]   ;;  %s198_s1 = inlined_call_operand.vmem [shape: s32[16,1], index: 1, kind: input, shape index: {}]   ;;  %s199_s2 = inlined_call_operand.hbm [shape: f32[1], index: 2, kind: output, shape index: {}]  }
   0x1   :  { %v19_v0 = vld [vmem:[%s197_s0] sm:$0xff]  ;;  %131 = vset.pattern.permute.xlu1 %v157_v2 }
   0x2   :  { %v21_v1 = vld [vmem:[%s198_s1] sm:$0xff]  ;;  %23 = vmax.xlane.f32.xlu0 %v19_v0 }
   0x3   :  { %7 = vsyncpa [#allocation4], 0  ;;  %46 = vperm.xlu1 %131, %v21_v1   ;;  %132 = vset.pattern.permute.xlu0 %v157_v2  ;;  %v20_v3 = vld [vmem:[%s197_s0 + $0x8] sm:$0xff]  ;;  %v43_v5 = vlaneseq  ;;  %vm16_vm2 = vcmask 7168   ;;  %v158_v19 = vmov 0.0   ;;  %v159_v41 = vmov 16.0  }
   0x4   :  { %v22_v4 = vld [vmem:[%s198_s1 + $0x8] sm:$0xff]  ;;  %18 = vst.msk [vmem:[#allocation2 + $0x8] sm:$0xff] %vm16_vm2, %v158_v19  ;;  %s113_s18 = sshll.u32 %s199_s2, 4  ;;  %s160_s22 = smov [#allocation3]   ;;  %s114_s18 = int_to_ptr.hbm [resolvable:$true] %s113_s18 }
   0x5   :  { %v44_v6 = vand.u32 127, %v43_v5  ;;  %17 = vst.msk [vmem:[#allocation2] sm:$0xff] %vm16_vm2, %v158_v19 }
   0xa   :  { %25 = vmax.xlane.f32.xlu0 %v20_v3 }
   0xb   :  { %49 = vperm.xlu1 %131, %v22_v4   ;;  %v69_v33 = vld [vmem:[#allocation2 + $0x8] sm:$0xff] }
   0xc   :  { %v68_v26 = vld [vmem:[#allocation2] sm:$0xff] }
  0x75   :  { %v24_v7 = vpop.xlane.xlu0 %23  ;;  %v47_v8 = vpop.permute.xlu1 %46 }
  0x76   :  { %v27_v9 = vsub.f32 %v19_v0, %v24_v7  ;;  %vm51_vm0 = vcmp.eq.s32.totalorder %v44_v6, %v47_v8 }
  0x77   :  { %v53_v10 = vsel %vm51_vm0, %v19_v0, 0.0 }
  0x78   :  { %v29_v11 = vmul.f32 1.442695, %v27_v9  ;;  %55 = vadd.xlane.f32.xlu0 %v53_v10 }
  0x7a   :  { %133 = vpow2.f32 %v29_v11 }
  0x7d   :  { %v26_v12 = vpop.xlane.xlu0 %25  ;;  %v50_v13 = vpop.permute.xlu1 %49 }
  0x7e   :  { %v28_v14 = vsub.f32 %v20_v3, %v26_v12  ;;  %vm52_vm1 = vcmp.eq.s32.totalorder %v44_v6, %v50_v13 }
  0x7f   :  { %v54_v15 = vsel %vm52_vm1, %v20_v3, 0.0 }
  0x80   :  { %v134_v16 = vpop.eup %133  ;;  %v31_v17 = vmul.f32 1.442695, %v28_v14  ;;  %57 = vadd.xlane.f32.xlu1 %v54_v15 }
  0x81   :  { %33 = vadd.xlane.f32.xlu2 %v134_v16 }
  0x82   :  { %135 = vpow2.f32 %v31_v17 }
  0x88   :  { %v136_v18 = vpop.eup %135 }
  0x89   :  { %35 = vadd.xlane.f32.xlu2 %v136_v18 }
  0xeb   :  { %v56_v24 = vpop.xlane.xlu0 %55 }
  0xf3   :  { %v58_v32 = vpop.xlane.xlu1 %57 }
  0xf4   :  { %v34_v20 = vpop.xlane.xlu2 %33 }
  0xf5   :  { %137 = vlog2.f32 %v34_v20 }
  0xfb   :  { %v138_v21 = vpop.eup %137 }
  0xfc   :  { %v38_v22 = vmul.f32 0.6931472, %v138_v21  ;;  %v36_v23 = vpop.xlane.xlu2 %35 }
  0xfd   :  { %139 = vlog2.f32 %v36_v23 }
  0xfe   :  { %v41_v25 = vadd.f32 %v38_v22, %v24_v7  ;;  %141 = vrcp.f32 %v159_v41 }
 0x100   :  { %v70_v27 = vsub.f32 %v56_v24, %v41_v25 }
 0x102   :  { %v74_v28 = vadd.f32 %v70_v27, %v68_v26 }
 0x103   :  { %v140_v29 = vpop.eup %139 }
 0x104   :  { %v40_v30 = vmul.f32 0.6931472, %v140_v29  ;;  %77 = vst.msk [vmem:[#allocation2] sm:$0xff] %vm16_vm2, %v74_v28  ;;  %v142_v42 = vpop.eup %141 }
 0x105   :  { %v97_v43 = vmul.f32 16.0, %v142_v42  ;;  %vm101_vm3 = vweird.f32 %v142_v42 }
 0x106   :  { %v42_v31 = vadd.f32 %v40_v30, %v26_v12 }
 0x107   :  { %v98_v44 = vsub.f32 1.0, %v97_v43 }
 0x108   :  { %v71_v34 = vsub.f32 %v58_v32, %v42_v31 }
 0x109   :  { %v99_v48 = vmul.f32 %v142_v42, %v98_v44 }
 0x10a   :  { %v75_v35 = vadd.f32 %v71_v34, %v69_v33 }
 0x10b   :  { %v82_v36 = vld [vmem:[#allocation2] sm:$0xff]  ;;  %v100_v51 = vadd.f32 %v142_v42, %v99_v48 }
 0x10c   :  { %78 = vst.msk [vmem:[#allocation2 + $0x8] sm:$0xff] %vm16_vm2, %v75_v35  ;;  %v84_v38 = vsel %vm16_vm2, %v82_v36, 0.0 }
 0x10d   :  { %v102_v54 = vsel %vm101_vm3, %v142_v42, %v100_v51 }
 0x113   :  { %v83_v37 = vld [vmem:[#allocation2 + $0x8] sm:$0xff] }
 0x114   :  { %v85_v39 = vsel %vm16_vm2, %v83_v37, 0.0 }
 0x115   :  { %v86_v40 = vadd.f32 %v85_v39, %v84_v38 }
 0x117   :  { %87 = vadd.xlane.f32.xlu2 %v86_v40 }
 0x18a   :  { %v88_v45 = vpop.xlane.xlu2 %87 }
 0x18b   :  { %v89_v46 = vrot.slane %v88_v45, 4 }
 0x18d   :  { %v90_v47 = vadd.f32 %v89_v46, %v88_v45 }
 0x18f   :  { %v91_v49 = vrot.slane %v90_v47, 2 }
 0x191   :  { %v92_v50 = vadd.f32 %v91_v49, %v90_v47 }
 0x193   :  { %v93_v52 = vrot.slane %v92_v50, 1 }
 0x195   :  { %v94_v53 = vadd.f32 %v93_v52, %v92_v50 }
 0x197   :  { %123 = vpush %v94_v53 }
 0x198   :  { %125 = vpush %v102_v54 }
 0x1c8   :  { %s124_s0 = spop %123 }
 0x1c9   :  { %s126_s19 = spop %125 }
 0x1ca   :  { %s104_s20 = smul.f32 %s126_s19, %s124_s0 }
 0x1cc   :  { %s105_s21 = ssub.f32 0.0, %s104_s20 }
 0x1ce   :  { %107 = sst [smem:[#allocation3]] %s105_s21 }
 0x1cf   :  { %116 = dma.smem_to_hbm %s160_s22, 16, %s114_s18, [#allocation4]  }
 0x1d0   :  { %155 = dma.done.wait [#allocation4], 16  }
 0x1d1   :  { %156 = vsyncadd [#allocation4], 4294967280 }
 0x1d2   :  { %121 = sfence }
 0x1d3   :  { %122 = vsyncpa [#allocation4], 1 }

</bundles_post_ra>
